<compile_context>
chip_gen: v7x
topology: tpu7x:2x2x1
jax: 0.10.0
libtpu: 0.0.40
codegen_flags: <defaults>
</compile_context>

<pallas_src>
import functools

import jax
import jax.numpy as jnp
from jax.experimental import pallas as pl
from jax.experimental.pallas import tpu as pltpu

SCALED_SILU = 1.0 / 0.6  # gemnet ScaledSiLU: silu(x) / 0.6


def _lattice_kernel(num_graphs, packed_ref, wa_ref, wb_ref, out_ref, acc_ref):
    t = pl.program_id(1)

    @pl.when(t == 0)
    def _init():
        acc_ref[...] = jnp.zeros_like(acc_ref)

    pk = packed_ref[...]                                                  # (TE, LW)

    # ---- fused edge MLP (MXU): zero rows in the weights select the emb / rbf
    # lane ranges of the packed block, so no in-kernel lane slicing is needed.
    a = jnp.dot(pk, wa_ref[...], preferred_element_type=jnp.float32)     # (TE, D) = emb @ W1
    b = jnp.dot(pk, wb_ref[...], preferred_element_type=jnp.float32)     # (TE, D) = rbf @ W_rbf2
    prod = jax.nn.silu(a) * SCALED_SILU * b                              # (TE, D)

    # head-summed score; row-sum moved to the MXU (ones column) instead of the XLU.
    s = jnp.dot(prod, jnp.ones((prod.shape[-1], 1), jnp.float32),
                preferred_element_type=jnp.float32)                      # (TE, 1)

    # ---- scatter-add over graphs: score-scaled one-hot (TE,B) @ packed (TE,LW).
    # The outer9 lanes of the result hold the lattice-score contribution; other
    # accumulated lanes are ignored by the wrapper (same MXU cost at this width).
    bidx = pk[:, 0:1].astype(jnp.int32)                                  # lane 0: graph index
    oh_s = jnp.where(
        jax.lax.broadcasted_iota(jnp.int32, (pk.shape[0], num_graphs), 1) == bidx,
        s, 0.0)                                                          # (TE, B); pad rows -> 0
    acc_ref[...] += jax.lax.dot_general(
        oh_s, pk, (((0,), (0,)), ((), ())),
        preferred_element_type=jnp.float32)                              # (B, LW)

    @pl.when(t == pl.num_programs(1) - 1)
    def _finalize():
        out_ref[0] = acc_ref[...]                                        # this split's partial


def rbf_lattice_update_frac(params, edge_emb, edge_index, distance_vec, lattice,
                            batch, rbf, normalize_score=True,
                            tile_edges=2048, num_splits=1):
    E, D = edge_emb.shape
    R = rbf.shape[-1]
    num_graphs = lattice.shape[0]

    batch_edge = batch[edge_index[0]].astype(jnp.int32)                  # (E,)
    counts = jax.ops.segment_sum(jnp.ones((E,), jnp.float32), batch_edge,
                                 num_segments=num_graphs)                # (B,)

    # Exact algebraic folds (bias-free Dense; head-sum / normalize / symmetrize linear).
    w_out_sum = jnp.sum(params["w_out"], axis=-1)                        # (D,)
    w_rbf2 = (params["w_rbf"] * w_out_sum[None, :]) @ params["w2"].T     # (R, D)

    # Per-edge geometric factor, flattened: outer9[e, 3j+k] = vhat[e,j] * vec[e,k].
    inv_norm = jax.lax.rsqrt(jnp.maximum(
        jnp.sum(distance_vec * distance_vec, axis=-1, keepdims=True), 1e-12))
    outer9 = ((distance_vec * inv_norm)[:, :, None]
              * distance_vec[:, None, :]).reshape(E, 9)

    # One lane-dense packed edge stream: [bidx | emb(D) | rbf(R) | outer9(9) | 0-pad].
    used = 1 + D + R + 9
    lane_w = ((used + 63) // 64) * 64
    packed = jnp.concatenate(
        [batch_edge[:, None].astype(jnp.float32), edge_emb, rbf, outer9], axis=-1)

    # Clamp tile for tiny inputs (block 2nd-to-last dim must be a multiple of 8).
    tile_edges = max(8, min(tile_edges, ((E + 7) // 8) * 8))
    chunk = tile_edges * num_splits
    e_pad = pl.cdiv(E, chunk) * chunk
    # Zero pad rows give emb=rbf=outer9=0 -> zero score & zero contribution.
    packed = jnp.pad(packed, ((0, e_pad - E), (0, lane_w - used)))

    # Zero-row-padded weights pick out the emb / rbf lanes of the packed block.
    wa = jnp.zeros((lane_w, D), jnp.float32).at[1:1 + D].set(params["w1"])
    wb = jnp.zeros((lane_w, D), jnp.float32).at[1 + D:1 + D + R].set(w_rbf2)

    tiles_per_split = e_pad // chunk
    grid = (num_splits, tiles_per_split)
    kernel = functools.partial(_lattice_kernel, num_graphs)

    edge_map = lambda p, t: (p * tiles_per_split + t, 0)
    const_map = lambda p, t: (0, 0)

    # VMEM @ tile_edges=2048, lane_w=64: packed block 512 KiB (1 MiB double-buffered)
    # + two (lane_w, D) weights -> far under the scoped default on v5e/v6e/v7x.
    partial_out = pl.pallas_call(
        kernel,
        out_shape=jax.ShapeDtypeStruct((num_splits, num_graphs, lane_w), jnp.float32),
        grid_spec=pltpu.PrefetchScalarGridSpec(
            num_scalar_prefetch=0,
            grid=grid,
            in_specs=[
                pl.BlockSpec((tile_edges, lane_w), edge_map),
                pl.BlockSpec((lane_w, D), const_map),
                pl.BlockSpec((lane_w, D), const_map),
            ],
            out_specs=pl.BlockSpec((1, num_graphs, lane_w), lambda p, t: (p, 0, 0)),
            scratch_shapes=[pltpu.VMEM((num_graphs, lane_w), jnp.float32)],
        ),
        # TODO(synk): on v7x call with num_splits=2 and, if plain "parallel" does not
        # shard across the two TensorCores, switch the leading axis to
        # pltpu.CORE_PARALLEL so each core owns half the edge range.
        compiler_params=pltpu.CompilerParams(
            dimension_semantics=("parallel", "arbitrary")),
    )(packed, wa, wb)

    out_flat = jnp.sum(partial_out, axis=0)[:, 1 + D + R:1 + D + R + 9]  # (B, 9)
    if normalize_score:
        # NOTE: graphs with zero edges return 0 here (reference would be 0/0 = NaN).
        out_flat = out_flat / jnp.maximum(counts, 1.0)[:, None]
    out3 = out_flat.reshape(num_graphs, 3, 3)
    return 0.5 * (out3 + jnp.swapaxes(out3, -1, -2))                     # symmetrize (glue)


def reference(params, edge_emb, edge_index, distance_vec, lattice, batch, rbf,
              normalize_score=True):
    """Pure-JAX reference of the same forward semantics (per-head, unfused)."""
    B = lattice.shape[0]
    h = jax.nn.silu(edge_emb @ params["w1"]) * SCALED_SILU
    x_f = h @ params["w2"]
    rbf_emb = rbf @ params["w_rbf"]
    scores = (x_f * rbf_emb) @ params["w_out"]                           # (E, H)
    batch_edge = batch[edge_index[0]]
    if normalize_score:
        counts = jax.ops.segment_sum(jnp.ones((edge_emb.shape[0],), jnp.float32),
                                     batch_edge, B)
        scores = scores / counts[batch_edge][:, None]
    vhat = distance_vec / jnp.linalg.norm(distance_vec, axis=-1, keepdims=True)
    outs = jnp.zeros((B, 3, 3), jnp.float32)
    for i in range(scores.shape[-1]):
        per_edge = scores[:, i][:, None, None] * vhat[:, :, None] * distance_vec[:, None, :]
        lat = jax.ops.segment_sum(per_edge, batch_edge, B)
        lat = 0.5 * (lat + jnp.swapaxes(lat, -1, -2))
        outs = outs + lat
    return outs


if __name__ == "__main__":
    # small shapes: emb_size = emb_size_edge = 32, emb_size_rbf = 16, num_heads = 2
    B, N, E, D, R, H = 2, 16, 64, 32, 16, 2

    key = jax.random.PRNGKey(0)
    k_emb, k_rbf, k_vec, k_idx, kw1, kw2, kwr, kwo = jax.random.split(key, 8)

    edge_emb = jax.random.normal(k_emb, (E, D), jnp.float32)
    rbf = jax.random.normal(k_rbf, (E, R), jnp.float32)
    distance_vec = jax.random.normal(k_vec, (E, 3), jnp.float32)
    edge_index = jax.random.randint(k_idx, (2, E), 0, N, dtype=jnp.int32)
    batch = jnp.repeat(jnp.arange(B, dtype=jnp.int32), N // B)           # (N,)
    lattice = jnp.tile(jnp.eye(3, dtype=jnp.float32), (B, 1, 1))         # unused (frac variant)

    params = {
        "w1":    jax.random.normal(kw1, (D, D), jnp.float32) / jnp.sqrt(D),
        "w2":    jax.random.normal(kw2, (D, D), jnp.float32) / jnp.sqrt(D),
        "w_rbf": jax.random.normal(kwr, (R, D), jnp.float32) / jnp.sqrt(R),
        "w_out": jax.random.normal(kwo, (D, H), jnp.float32) / jnp.sqrt(D),
    }

    out = rbf_lattice_update_frac(params, edge_emb, edge_index, distance_vec,
                                  lattice, batch, rbf, normalize_score=True)
    out = jax.block_until_ready(out)

    ref = reference(params, edge_emb, edge_index, distance_vec, lattice, batch,
                    rbf, normalize_score=True)
    assert out.shape == (B, 3, 3)
    assert jnp.allclose(out, ref, rtol=1e-4, atol=1e-4), "kernel/reference mismatch"

    print("KERNEL_OK")
</pallas_src>

<mosaic_0001>
module attributes {stable_mosaic.version = 11 : i64} {
  func.func @_lattice_kernel(%arg0: i32, %arg1: i32, %arg2: memref<64x64xf32, #tpu.memory_space<vmem>>, %arg3: memref<64x32xf32, #tpu.memory_space<vmem>>, %arg4: memref<64x32xf32, #tpu.memory_space<vmem>>, %arg5: memref<1x2x64xf32, #tpu.memory_space<vmem>>, %arg6: memref<2x64xf32, #tpu.memory_space<vmem>>) attributes {dimension_semantics = [#tpu.dimension_semantics<parallel>, #tpu.dimension_semantics<arbitrary>], iteration_bounds = array<i64: 1, 1>, scalar_prefetch = 0 : i64, scratch_operands = 1 : i64, tpu.core_type = #tpu.core_type<tc>, window_params = [{transform_indices = @transform_0, window_bounds = array<i64: 64, 64>}, {pipeline_mode = #tpu.pipeline_mode<synchronous>, transform_indices = @transform_1, window_bounds = array<i64: 64, 32>}, {pipeline_mode = #tpu.pipeline_mode<synchronous>, transform_indices = @transform_2, window_bounds = array<i64: 64, 32>}, {transform_indices = @transform_3, window_bounds = array<i64: 1, 2, 64>}]} {
    %c0_i32 = arith.constant 0 : i32
    %0 = arith.cmpi eq, %arg1, %c0_i32 : i32
    %1 = arith.extui %0 : i1 to i32
    %c0_i32_0 = arith.constant 0 : i32
    %2 = arith.cmpi ne, %1, %c0_i32_0 : i32
    scf.if %2 {
      %cst_19 = arith.constant 0.000000e+00 : f32
      %35 = vector.broadcast %cst_19 : f32 to vector<2x64xf32>
      %c0_20 = arith.constant 0 : index
      %c0_21 = arith.constant 0 : index
      %36 = vector.load %arg6[%c0_20, %c0_21] : memref<2x64xf32, #tpu.memory_space<vmem>>, vector<2x64xf32>
      tpu.vector_store %arg6[%c0_20, %c0_21], %35 {strides = array<i32>} : memref<2x64xf32, #tpu.memory_space<vmem>>, vector<2x64xf32>,
    } else {
    }
    %c0 = arith.constant 0 : index
    %c0_1 = arith.constant 0 : index
    %3 = vector.load %arg2[%c0, %c0_1] : memref<64x64xf32, #tpu.memory_space<vmem>>, vector<64x64xf32>
    %c0_2 = arith.constant 0 : index
    %c0_3 = arith.constant 0 : index
    %4 = vector.load %arg3[%c0_2, %c0_3] : memref<64x32xf32, #tpu.memory_space<vmem>>, vector<64x32xf32>
    %cst = arith.constant dense<0.000000e+00> : vector<64x32xf32>
    %5 = tpu.matmul %3, %4, %cst {dimension_numbers = #tpu.dot_dimension_numbers<[1], [0], [0], [1], [0, 0, 1, 1], [], []>} : vector<64x64xf32>, vector<64x32xf32>, vector<64x32xf32> -> vector<64x32xf32>
    %c0_4 = arith.constant 0 : index
    %c0_5 = arith.constant 0 : index
    %6 = vector.load %arg4[%c0_4, %c0_5] : memref<64x32xf32, #tpu.memory_space<vmem>>, vector<64x32xf32>
    %cst_6 = arith.constant dense<0.000000e+00> : vector<64x32xf32>
    %7 = tpu.matmul %3, %6, %cst_6 {dimension_numbers = #tpu.dot_dimension_numbers<[1], [0], [0], [1], [0, 0, 1, 1], [], []>} : vector<64x64xf32>, vector<64x32xf32>, vector<64x32xf32> -> vector<64x32xf32>
    %8 = arith.negf %5 : vector<64x32xf32>
    %9 = math.exp %8 : vector<64x32xf32>
    %cst_7 = arith.constant 1.000000e+00 : f32
    %10 = vector.broadcast %cst_7 : f32 to vector<64x32xf32>
    %11 = arith.addf %10, %9 : vector<64x32xf32>
    %12 = arith.divf %10, %11 : vector<64x32xf32>
    %13 = arith.mulf %5, %12 : vector<64x32xf32>
    %cst_8 = arith.constant 1.66666663 : f32
    %14 = vector.broadcast %cst_8 : f32 to vector<64x32xf32>
    %15 = arith.mulf %13, %14 : vector<64x32xf32>
    %16 = arith.mulf %15, %7 : vector<64x32xf32>
    %cst_9 = arith.constant 1.000000e+00 : f32
    %17 = vector.broadcast %cst_9 : f32 to vector<32x1xf32>
    %cst_10 = arith.constant dense<0.000000e+00> : vector<64x1xf32>
    %18 = tpu.matmul %16, %17, %cst_10 {dimension_numbers = #tpu.dot_dimension_numbers<[1], [0], [0], [1], [0, 0, 1, 1], [], []>} : vector<64x32xf32>, vector<32x1xf32>, vector<64x1xf32> -> vector<64x1xf32>
    %19 = vector.extract_strided_slice %3 {offsets = [0, 0], sizes = [64, 1], strides = [1, 1]} : vector<64x64xf32> to vector<64x1xf32>
    %20 = arith.fptosi %19 : vector<64x1xf32> to vector<64x1xi32>
    %21 = tpu.iota {dimensions = array<i32: 1>} : vector<64x2xi32>
    %22 = vector.broadcast %20 : vector<64x1xi32> to vector<64x2xi32>
    %23 = arith.cmpi eq, %21, %22 : vector<64x2xi32>
    %cst_11 = arith.constant 0.000000e+00 : f32
    %24 = vector.shape_cast %18 : vector<64x1xf32> to vector<64x1xf32>
    %25 = vector.broadcast %24 : vector<64x1xf32> to vector<64x2xf32>
    %26 = vector.broadcast %cst_11 : f32 to vector<64x2xf32>
    %27 = arith.select %23, %25, %26 : vector<64x2xi1>, vector<64x2xf32>
    %c0_12 = arith.constant 0 : index
    %c0_13 = arith.constant 0 : index
    %28 = vector.load %arg6[%c0_12, %c0_13] : memref<2x64xf32, #tpu.memory_space<vmem>>, vector<2x64xf32>
    %cst_14 = arith.constant dense<0.000000e+00> : vector<2x64xf32>
    %29 = tpu.matmul %27, %3, %cst_14 {dimension_numbers = #tpu.dot_dimension_numbers<[0], [0], [1], [1], [0, 1, 1, 1], [], []>} : vector<64x2xf32>, vector<64x64xf32>, vector<2x64xf32> -> vector<2x64xf32>
    %30 = arith.addf %28, %29 : vector<2x64xf32>
    %c0_15 = arith.constant 0 : index
    %c0_16 = arith.constant 0 : index
    %31 = vector.load %arg6[%c0_15, %c0_16] : memref<2x64xf32, #tpu.memory_space<vmem>>, vector<2x64xf32>
    tpu.vector_store %arg6[%c0_15, %c0_16], %30 {strides = array<i32>} : memref<2x64xf32, #tpu.memory_space<vmem>>, vector<2x64xf32>,
    %c0_i32_17 = arith.constant 0 : i32
    %32 = arith.cmpi eq, %arg1, %c0_i32_17 : i32
    %33 = arith.extui %32 : i1 to i32
    %c0_i32_18 = arith.constant 0 : i32
    %34 = arith.cmpi ne, %33, %c0_i32_18 : i32
    scf.if %34 {
      %c0_19 = arith.constant 0 : index
      %c0_20 = arith.constant 0 : index
      %35 = vector.load %arg6[%c0_19, %c0_20] : memref<2x64xf32, #tpu.memory_space<vmem>>, vector<2x64xf32>
      %c0_21 = arith.constant 0 : index
      %c0_22 = arith.constant 0 : index
      %c0_23 = arith.constant 0 : index
      %36 = vector.load %arg5[%c0_21, %c0_22, %c0_23] : memref<1x2x64xf32, #tpu.memory_space<vmem>>, vector<1x2x64xf32>
      %37 = vector.shape_cast %36 : vector<1x2x64xf32> to vector<2x64xf32>
      %38 = vector.shape_cast %35 : vector<2x64xf32> to vector<1x2x64xf32>
      tpu.vector_store %arg5[%c0_21, %c0_22, %c0_23], %38 {strides = array<i32>} : memref<1x2x64xf32, #tpu.memory_space<vmem>>, vector<1x2x64xf32>,
    } else {
    }
    return
  }
  func.func @transform_0(%arg0: i32, %arg1: i32) -> (i32, i32) {
    %c1_i32 = arith.constant 1 : i32
    %0 = arith.muli %arg0, %c1_i32 : i32
    %1 = arith.addi %0, %arg1 : i32
    %c0_i32 = arith.constant 0 : i32
    %c0_i32_0 = arith.constant 0 : i32
    return %1, %c0_i32 : i32, i32
  }
  func.func @transform_1(%arg0: i32, %arg1: i32) -> (i32, i32) {
    %c0_i32 = arith.constant 0 : i32
    %c0_i32_0 = arith.constant 0 : i32
    %c0_i32_1 = arith.constant 0 : i32
    return %c0_i32, %c0_i32_0 : i32, i32
  }
  func.func @transform_2(%arg0: i32, %arg1: i32) -> (i32, i32) {
    %c0_i32 = arith.constant 0 : i32
    %c0_i32_0 = arith.constant 0 : i32
    %c0_i32_1 = arith.constant 0 : i32
    return %c0_i32, %c0_i32_0 : i32, i32
  }
  func.func @transform_3(%arg0: i32, %arg1: i32) -> (i32, i32, i32) {
    %c0_i32 = arith.constant 0 : i32
    %c0_i32_0 = arith.constant 0 : i32
    %c0_i32_1 = arith.constant 0 : i32
    return %arg0, %c0_i32, %c0_i32_0 : i32, i32, i32
  }
}

</mosaic_0001>

<bundles_post_ra>
// kernel: tpu_custom_call.1
= control target key start
LH: loop header
LB: loop body
LE: loop exit
PB: predicated region body
PF: predicated region fallthrough
CT: control target
= control target key end

     0   :  { %vm59_vm0 = vcmask 523264   ;;  %s1227_s0 = inlined_call_operand.vmem [shape: f32[64,64], index: 0, kind: input, shape index: {}]   ;;  %s1228_s1 = inlined_call_operand.vmem [shape: f32[64,32], index: 1, kind: input, shape index: {}]   ;;  %s1229_s2 = inlined_call_operand.vmem [shape: f32[64,32], index: 2, kind: input, shape index: {}]   ;;  %s1230_s3 = inlined_call_operand.hbm [shape: f32[1,2,64], index: 3, kind: output, shape index: {}]  }
   0x1   :  { %v51_v0 = vld [vmem:[%s1228_s1] sm:$0xff]  ;;  %v52_v1 = vld [vmem:[%s1228_s1 + $0x8] sm:$0xff]  ;;  %v53_v2 = vld [vmem:[%s1228_s1 + $0x10] sm:$0xff] }
   0x2   :  { %v909_v3 = vpack.c.bf16 %v52_v1, %v51_v0  ;;  %v54_v4 = vld [vmem:[%s1228_s1 + $0x18] sm:$0xff]  ;;  %v55_v6 = vld [vmem:[%s1228_s1 + $0x20] sm:$0xff]  ;;  %v56_v7 = vld [vmem:[%s1228_s1 + $0x28] sm:$0xff] }
   0x3   :  { %v913_v5 = vpack.c.bf16 %v54_v4, %v53_v2  ;;  %v1084_v8 = vld [vmem:[%s1227_s0] sm:$0xff]  ;;  %v917_v9 = vpack.c.bf16 %v56_v7, %v55_v6  ;;  %v57_v10 = vld [vmem:[%s1228_s1 + $0x30] sm:$0xff]  ;;  %v190_v12 = vld [vmem:[%s1229_s2 + $0x8] sm:$0xff] }
   0x4   :  { %910 = vmatprep.subr.bf16.mxu0 %v909_v3  ;;  %830 = vmatprep.mubr.msk.f32.mxu0 %vm59_vm0, %v1084_v8  ;;  %v189_v11 = vld [vmem:[%s1229_s2] sm:$0xff]  ;;  %v58_v13 = vld [vmem:[%s1228_s1 + $0x38] sm:$0xff]  ;;  %v191_v15 = vld [vmem:[%s1229_s2 + $0x10] sm:$0xff] }
   0x5   :  { %912 = vmatpush3.bf16.msra.mxu0 %v909_v3  ;;  %858 = vmatprep.mubr.msk.f32.mxu1 %vm59_vm0, %v1084_v8  ;;  %v925_v14 = vpack.c.bf16 %v190_v12, %v189_v11  ;;  %v192_v16 = vld [vmem:[%s1229_s2 + $0x18] sm:$0xff]  ;;  %v193_v18 = vld [vmem:[%s1229_s2 + $0x20] sm:$0xff]  ;;  %v194_v19 = vld [vmem:[%s1229_s2 + $0x28] sm:$0xff] }
   0x6   :  { %914 = vmatprep.subr.bf16.mxu0 %v913_v5  ;;  %v929_v17 = vpack.c.bf16 %v192_v16, %v191_v15 }
   0x7   :  { %926 = vmatprep.subr.bf16.mxu1 %v925_v14 }
   0x9   :  { %916 = vmatpush3.bf16.msra.mxu0 %v913_v5 }
   0xa   :  { %8 = vsyncpa [#allocation4], 0  ;;  %918 = vmatprep.subr.bf16.mxu0 %v917_v9  ;;  %v921_v20 = vpack.c.bf16 %v58_v13, %v57_v10  ;;  %928 = vmatpush3.bf16.msra.mxu1 %v925_v14  ;;  %v933_v21 = vpack.c.bf16 %v194_v19, %v193_v18  ;;  %v195_v22 = vld [vmem:[%s1229_s2 + $0x30] sm:$0xff]  ;;  %v196_v23 = vld [vmem:[%s1229_s2 + $0x38] sm:$0xff]  ;;  %v1037_v32 = vmov 1.0|1.0   ;;  %v957_v33 = vtrunc.f32 %v1084_v8 }
   0xb   :  { %930 = vmatprep.subr.bf16.mxu1 %v929_v17  ;;  %v937_v24 = vpack.c.bf16 %v196_v23, %v195_v22  ;;  %v1123_v25 = vld [vmem:[%s1227_s0 + $0x8] sm:$0xff]  ;;  %v1128_v26 = vld [vmem:[%s1227_s0 + $0x10] sm:$0xff]  ;;  %v1137_v27 = vld [vmem:[%s1227_s0 + $0x18] sm:$0xff]  ;;  %v1038_v35 = vmov 0   ;;  %vm374_vm1 = vcmask 261120   ;;  %vm1040_vm3 = vmmov 0  }
   0xc   :  { %v1142_v28 = vld [vmem:[%s1227_s0 + $0x20] sm:$0xff]  ;;  %v1151_v29 = vld [vmem:[%s1227_s0 + $0x28] sm:$0xff]  ;;  %v1158_v30 = vld [vmem:[%s1227_s0 + $0x30] sm:$0xff]  ;;  %v961_v34 = vtrunc.f32 %v1128_v26  ;;  %979 = vset.pattern.permute.xlu0 %v1038_v35  ;;  %980 = vset.pattern.permute.xlu1 %v1038_v35  ;;  %v959_v36 = vtrunc.f32 %v1123_v25  ;;  %v958_v37 = vcvt.f32.s32 %v957_v33  ;;  %v963_v40 = vtrunc.f32 %v1137_v27 }
   0xd   :  { %920 = vmatpush3.bf16.msra.mxu0 %v917_v9  ;;  %v1169_v31 = vld [vmem:[%s1227_s0 + $0x38] sm:$0xff]  ;;  %vm41_vm4 = vcmask 517120   ;;  %s1042_s0 = smov [#allocation3]  }
   0xe   :  { %922 = vmatprep.subr.bf16.mxu0 %v921_v20  ;;  %932 = vmatpush3.bf16.msra.mxu1 %v929_v17  ;;  %v960_v38 = vcvt.f32.s32 %v959_v36  ;;  %v962_v39 = vcvt.f32.s32 %v961_v34  ;;  %v964_v41 = vcvt.f32.s32 %v963_v40  ;;  %s714_s4 = sshll.u32 %s1042_s0, 4  ;;  %s715_s4 = int_to_ptr.vmem [resolvable:$true] %s714_s4 }
   0xf   :  { %934 = vmatprep.subr.bf16.mxu1 %v933_v21  ;;  %515 = vperm.xlu0 %979, %v958_v37   ;;  %s1013_s5 = scalar_lea.vmem %s715_s4, 32  ;;  %p1018_p1 = scmp.lt.s32.totalorder %s715_s4, %s715_s4 }
  0x10   :  { %518 = vperm.xlu1 %980, %v960_v38   ;;  %p1014_p0 = scmp.ne.s32.totalorder %s715_s4, %s1013_s5  ;;  %p1019_p2 = scmp.lt.s32.totalorder %s1013_s5, %s1013_s5 }
  0x11   :  { %924 = vmatpush3.bf16.msra.mxu0 %v921_v20 }
  0x12   :  { %936 = vmatpush3.bf16.msra.mxu1 %v933_v21  ;;  %941 = vmatprep.subr.bf16.mxu0 %v1037_v32  ;;  %p1020_p3 = por %p1019_p2, %p1018_p1 }
  0x13   :  { %938 = vmatprep.subr.bf16.mxu1 %v937_v24  ;;  %521 = vperm.xlu0 %979, %v962_v39  }
  0x14   :  { %831 = vmatmul.mubr.msk.f32.vlgmr.msra.gmra.mrb[0].mxu0 %vm59_vm0, %v1123_v25  ;;  %p1021_p4 = pnand %p1020_p3, %p1014_p0 }
  0x15   :  { %833 = vmatprep.mubr.msk.f32.mxu0 %vm59_vm0, %v1128_v26  ;;  %942 = vmatpush3.bf16.msra.mxu0 %v1037_v32 }
  0x16   :  { %940 = vmatpush3.bf16.msra.mxu1 %v937_v24  ;;  %943 = vmatprep.subr.bf16.mxu0 %v1037_v32 }
  0x17   :  { %524 = vperm.xlu0 %979, %v964_v41  }
  0x18   :  { %834 = vmatmul.mubr.msk.f32.gmra.mrb[2].mxu0 %vm59_vm0, %v1137_v27 }
  0x19   :  { %836 = vmatprep.mubr.msk.f32.mxu0 %vm59_vm0, %v1142_v28  ;;  %859 = vmatmul.mubr.msk.f32.vlgmr.msra.gmra.mrb[0].mxu1 %vm59_vm0, %v1123_v25 }
  0x1a   :  { %861 = vmatprep.mubr.msk.f32.mxu1 %vm59_vm0, %v1128_v26  ;;  %944 = vmatpush3.bf16.msra.mxu0 %v1037_v32 }
  0x1c   :  { %837 = vmatmul.mubr.msk.f32.gmra.mrb[4].mxu0 %vm59_vm0, %v1151_v29 }
  0x1d   :  { %839 = vmatprep.mubr.msk.f32.mxu0 %vm59_vm0, %v1158_v30  ;;  %862 = vmatmul.mubr.msk.f32.gmra.mrb[2].mxu1 %vm59_vm0, %v1137_v27 }
  0x1e   :  { %864 = vmatprep.mubr.msk.f32.mxu1 %vm59_vm0, %v1142_v28 }
  0x20   :  { %840 = vmatmul.mubr.msk.f32.gmra.mrb[6].mxu0 %vm59_vm0, %v1169_v31 }
  0x21   :  { %865 = vmatmul.mubr.msk.f32.gmra.mrb[4].mxu1 %vm59_vm0, %v1151_v29 }
  0x22   :  { %867 = vmatprep.mubr.msk.f32.mxu1 %vm59_vm0, %v1158_v30 }
  0x25   :  { %868 = vmatmul.mubr.msk.f32.gmra.mrb[6].mxu1 %vm59_vm0, %v1169_v31 }
  0xe7   :  { %v832_v42 = vpop.f32.mrb[0].mxu0 }
  0xe8   :  { %v745_v43 = vmul.f32 -1.442695, %v832_v42  ;;  %v150_v44 = vpop.f32.mrb[1].mxu0 }
  0xe9   :  { %v744_v45 = vmul.f32 -1.442695, %v150_v44 }
  0xea   :  { %981 = vpow2.f32 %v745_v43 }
  0xeb   :  { %983 = vpow2.f32 %v744_v45  ;;  %v835_v46 = vpop.f32.mrb[2].mxu0 }
  0xec   :  { %v747_v47 = vmul.f32 -1.442695, %v835_v46  ;;  %v160_v48 = vpop.f32.mrb[3].mxu0  ;;  %v860_v49 = vpop.f32.mrb[0].mxu1 }
  0xed   :  { %v746_v50 = vmul.f32 -1.442695, %v160_v48  ;;  %v263_v51 = vpop.f32.mrb[1].mxu1 }
  0xee   :  { %985 = vpow2.f32 %v747_v47 }
  0xef   :  { %987 = vpow2.f32 %v746_v50  ;;  %v838_v52 = vpop.f32.mrb[4].mxu0 }
  0xf0   :  { %v749_v53 = vmul.f32 -1.442695, %v838_v52  ;;  %v170_v54 = vpop.f32.mrb[5].mxu0  ;;  %v863_v55 = vpop.f32.mrb[2].mxu1 }
  0xf1   :  { %v748_v56 = vmul.f32 -1.442695, %v170_v54  ;;  %v273_v57 = vpop.f32.mrb[3].mxu1 }
  0xf2   :  { %989 = vpow2.f32 %v749_v53 }
  0xf3   :  { %991 = vpow2.f32 %v748_v56  ;;  %v841_v58 = vpop.f32.mrb[6].mxu0 }
  0xf4   :  { %v982_v59 = vpop.eup %981  ;;  %v751_v60 = vmul.f32 -1.442695, %v841_v58  ;;  %v1187_v61 = vpop.f32.mrb[7].mxu0 }
  0xf5   :  { %v866_v62 = vpop.f32.mrb[4].mxu1  ;;  %v984_v63 = vpop.eup %983  ;;  %v327_v0 = vadd.f32 1.0, %v982_v59  ;;  %v750_v1 = vmul.f32 -1.442695, %v1187_v61 }
  0xf6   :  { %v283_v2 = vpop.f32.mrb[5].mxu1  ;;  %v326_v3 = vadd.f32 1.0, %v984_v63  ;;  %993 = vpow2.f32 %v751_v60 }
  0xf7   :  { %995 = vrcp.f32 %v327_v0 }
  0xf8   :  { %v986_v4 = vpop.eup %985  ;;  %997 = vrcp.f32 %v326_v3  ;;  %v869_v5 = vpop.f32.mrb[6].mxu1 }
  0xf9   :  { %v988_v6 = vpop.eup %987  ;;  %v329_v7 = vadd.f32 1.0, %v986_v4  ;;  %999 = vpow2.f32 %v750_v1  ;;  %v293_v9 = vpop.f32.mrb[7].mxu1 }
  0xfa   :  { %v328_v10 = vadd.f32 1.0, %v988_v6  ;;  %v971_v6 = vtrunc.f32 %v1169_v31 }
  0xfb   :  { %1001 = vrcp.f32 %v329_v7 }
  0xfc   :  { %v990_v11 = vpop.eup %989  ;;  %1003 = vrcp.f32 %v328_v10 }
  0xfd   :  { %v992_v12 = vpop.eup %991  ;;  %v331_v13 = vadd.f32 1.0, %v990_v11  ;;  %v946_v11 = vpack.c.bf16 %v1123_v25, %v1084_v8  ;;  %v512_v25 = vlaneseq }
  0xfe   :  { %v330_v14 = vadd.f32 1.0, %v992_v12  ;;  %v1039_v12 = vmov 0.0|0.0  }
  0xff   :  { %1005 = vrcp.f32 %v331_v13  ;;  %945 = vmatprep.subr.bf16.mxu1 %v1039_v12  ;;  %v949_v13 = vpack.c.bf16 %v1137_v27, %v1128_v26 }
 0x100   :  { %v994_v15 = vpop.eup %993  ;;  %1007 = vrcp.f32 %v330_v14  ;;  %947 = vmatpush3.bf16.msra.mxu1 %v946_v11  ;;  %v952_v14 = vpack.c.bf16 %v1151_v29, %v1142_v28 }
 0x101   :  { %v996_v16 = vpop.eup %995  ;;  %v333_v17 = vadd.f32 1.0, %v994_v15  ;;  %948 = vmatprep.subr.bf16.mxu1 %v1039_v12  ;;  %v955_v15 = vpack.c.bf16 %v1169_v31, %v1158_v30 }
 0x102   :  { %v998_v18 = vpop.eup %997  ;;  %v351_v19 = vmul.f32 %v996_v16, %v832_v42  ;;  %v516_v16 = vpop.permute.xlu0 %515 }
 0x103   :  { %v1000_v20 = vpop.eup %999  ;;  %v350_v21 = vmul.f32 %v998_v18, %v150_v44  ;;  %1009 = vrcp.f32 %v333_v17  ;;  %v519_v17 = vpop.permute.xlu1 %518  ;;  %v513_v18 = vand.u32 127, %v512_v25 }
 0x104   :  { %v359_v22 = vmul.f32 1.6666666, %v351_v19  ;;  %v332_v23 = vadd.f32 1.0, %v1000_v20  ;;  %950 = vmatpush3.bf16.msra.mxu1 %v949_v13 }
 0x105   :  { %v1002_v24 = vpop.eup %1001  ;;  %v358_v32 = vmul.f32 1.6666666, %v350_v21  ;;  %951 = vmatprep.subr.bf16.mxu1 %v1039_v12  ;;  %vm538_vm2 = vcmp.eq.s32.totalorder %v513_v18, %v516_v16  ;;  %vm539_vm5 = vcmp.eq.s32.totalorder %v513_v18, %v519_v17 }
 0x106   :  { %v1004_v33 = vpop.eup %1003  ;;  %v353_v34 = vmul.f32 %v1002_v24, %v835_v46  ;;  %1011 = vrcp.f32 %v332_v23  ;;  %v367_v35 = vmul.f32 %v860_v49, %v359_v22  ;;  %v522_v8 = vpop.permute.xlu0 %521 }
 0x107   :  { %v352_v36 = vmul.f32 %v1004_v33, %v160_v48  ;;  %v366_v37 = vmul.f32 %v358_v32, %v263_v51  ;;  %vm540_vm6 = vcmp.eq.s32.totalorder %v513_v18, %v522_v8 }
 0x108   :  { %v361_v38 = vmul.f32 1.6666666, %v353_v34  ;;  %953 = vmatpush3.bf16.msra.mxu1 %v952_v14 }
 0x109   :  { %v1006_v39 = vpop.eup %1005  ;;  %v360_v40 = vmul.f32 1.6666666, %v352_v36  ;;  %878 = vmatprep.mubr.msk.f32.mxu0 %vm374_vm1, %v366_v37  ;;  %954 = vmatprep.subr.bf16.mxu1 %v1039_v12 }
 0x10a   :  { %v1008_v41 = vpop.eup %1007  ;;  %v355_v42 = vmul.f32 %v1006_v39, %v838_v52  ;;  %v369_v43 = vmul.f32 %v863_v55, %v361_v38  ;;  %879 = vmatmul.mubr.msk.f32.vlgmr.msra.gmra.mrb[8].mxu0 %vm374_vm1, %v367_v35  ;;  %v525_v19 = vpop.permute.xlu0 %524 }
 0x10b   :  { %v354_v44 = vmul.f32 %v1008_v41, %v170_v54  ;;  %v368_v45 = vmul.f32 %v360_v40, %v273_v57  ;;  %v965_v57 = vtrunc.f32 %v1142_v28  ;;  %v1041_v28 = vmov 0.0  }
 0x10c   :  { %v363_v47 = vmul.f32 1.6666666, %v355_v42  ;;  %956 = vmatpush3.bf16.msra.mxu1 %v955_v15  ;;  %906 = vmatprep.mubr.msk.f32.mxu1 %vm1040_vm3, %v1041_v28  ;;  %42 = vst.msk [vmem:[#allocation2] sm:$0x3] %vm41_vm4, %v1041_v28  ;;  %vm541_vm7 = vcmp.eq.s32.totalorder %v513_v18, %v525_v19 }
 0x10d   :  { %v1010_v50 = vpop.eup %1009  ;;  %v362_v46 = vmul.f32 1.6666666, %v354_v44  ;;  %881 = vmatprep.mubr.msk.f32.mxu0 %vm374_vm1, %v368_v45 }
 0x10e   :  { %v357_v49 = vmul.f32 %v1010_v50, %v841_v58  ;;  %v371_v48 = vmul.f32 %v866_v62, %v363_v47  ;;  %882 = vmatmul.mubr.msk.f32.gmra.mrb[10].mxu0 %vm374_vm1, %v369_v43  ;;  %v966_v62 = vcvt.f32.s32 %v965_v57 }
 0x10f   :  { %v370_v51 = vmul.f32 %v362_v46, %v283_v2  ;;  %v969_v2 = vtrunc.f32 %v1158_v30 }
 0x110   :  { %v1012_v53 = vpop.eup %1011  ;;  %v365_v56 = vmul.f32 1.6666666, %v357_v49 }
 0x111   :  { %v356_v59 = vmul.f32 %v1012_v53, %v1187_v61  ;;  %884 = vmatprep.mubr.msk.f32.mxu0 %vm374_vm1, %v370_v51  ;;  %v967_v61 = vtrunc.f32 %v1151_v29 }
 0x112   :  { %v373_v52 = vmul.f32 %v869_v5, %v365_v56  ;;  %885 = vmatmul.mubr.msk.f32.gmra.mrb[12].mxu0 %vm374_vm1, %v371_v48  ;;  %v970_v5 = vcvt.f32.s32 %v969_v2 }
 0x113   :  { %v364_v54 = vmul.f32 1.6666666, %v356_v59  ;;  %v968_v1 = vcvt.f32.s32 %v967_v61  ;;  %v594_v43 = vld [vmem:[#allocation2] sm:$0x3] }
 0x115   :  { %v372_v55 = vmul.f32 %v364_v54, %v293_v9  ;;  %v972_v9 = vcvt.f32.s32 %v971_v6 }
 0x117   :  { %887 = vmatprep.mubr.msk.f32.mxu0 %vm374_vm1, %v372_v55 }
 0x118   :  { %888 = vmatmul.mubr.msk.f32.gmra.mrb[14].mxu0 %vm374_vm1, %v373_v52 }
 0x1dd   :  { %v880_v58 = vpop.f32.mrb[8].mxu0 }
 0x1de   :  { %553 = vperm.xlu1 %980, %v880_v58   ;;  %v465_v60 = vpop.f32.mrb[9].mxu0 }
 0x1df   :  { %548 = vperm.xlu0 %979, %v465_v60  }
 0x1e1   :  { %v883_v63 = vpop.f32.mrb[10].mxu0 }
 0x1e2   :  { %563 = vperm.xlu1 %980, %v883_v63   ;;  %v475_v0 = vpop.f32.mrb[11].mxu0 }
 0x1e3   :  { %527 = vperm.xlu0 %979, %v966_v62  }
 0x1e5   :  { %v886_v3 = vpop.f32.mrb[12].mxu0 }
 0x1e6   :  { %558 = vperm.xlu1 %980, %v475_v0   ;;  %v485_v4 = vpop.f32.mrb[13].mxu0 }
 0x1e7   :  { %530 = vperm.xlu0 %979, %v968_v1  }
 0x1ea   :  { %573 = vperm.xlu1 %980, %v886_v3  }
 0x1eb   :  { %v889_v7 = vpop.f32.mrb[14].mxu0  ;;  %533 = vperm.xlu0 %979, %v970_v5  }
 0x1ec   :  { %v495_v10 = vpop.f32.mrb[15].mxu0 }
 0x1ee   :  { %568 = vperm.xlu1 %980, %v485_v4  }
 0x1ef   :  { %536 = vperm.xlu0 %979, %v972_v9  }
 0x1f2   :  { %578 = vperm.xlu1 %980, %v495_v10  }
 0x1f6   :  { %583 = vperm.xlu1 %980, %v889_v7  }
 0x25d   :  { %v554_v20 = vpop.permute.xlu1 %553 }
 0x25e   :  { %v549_v26 = vpop.permute.xlu0 %548  ;;  %v587_v29 = vsel %vm539_vm5, %v554_v20, 0.0 }
 0x25f   :  { %v586_v27 = vsel %vm538_vm2, %v549_v26, 0.0 }
 0x260   :  { %595 = vxpose.xlu0.b32.start [1/8] (short) (narrow) %v586_v27, 8 }
 0x261   :  { %v564_v21 = vpop.permute.xlu1 %563 }
 0x262   :  { %v528_v30 = vpop.permute.xlu0 %527  ;;  %v589_v24 = vsel %vm541_vm7, %v564_v21, 0.0 }
 0x263   :  { %vm542_vm8 = vcmp.eq.s32.totalorder %v513_v18, %v528_v30 }
 0x264   :  { %596 = vxpose.xlu0.b32.cont [2/8] (short) (narrow) %v587_v29, 8 }
 0x265   :  { %v559_v31 = vpop.permute.xlu1 %558 }
 0x266   :  { %v588_v22 = vsel %vm540_vm6, %v559_v31, 0.0  ;;  %v531_v32 = vpop.permute.xlu0 %530 }
 0x267   :  { %vm543_vm9 = vcmp.eq.s32.totalorder %v513_v18, %v531_v32 }
 0x268   :  { %597 = vxpose.xlu0.b32.cont [3/8] (short) (narrow) %v588_v22, 8 }
 0x269   :  { %v574_v23 = vpop.permute.xlu1 %573 }
 0x26a   :  { %v534_v35 = vpop.permute.xlu0 %533  ;;  %v591_v37 = vsel %vm543_vm9, %v574_v23, 0.0 }
 0x26b   :  { %vm544_vm10 = vcmp.eq.s32.totalorder %v513_v18, %v534_v35 }
 0x26c   :  { %598 = vxpose.xlu0.b32.cont [4/8] (short) (narrow) %v589_v24, 8 }
 0x26d   :  { %v569_v33 = vpop.permute.xlu1 %568 }
 0x26e   :  { %v590_v34 = vsel %vm542_vm8, %v569_v33, 0.0  ;;  %v537_v38 = vpop.permute.xlu0 %536 }
 0x26f   :  { %vm545_vm11 = vcmp.eq.s32.totalorder %v513_v18, %v537_v38 }
 0x270   :  { %599 = vxpose.xlu0.b32.cont [5/8] (short) (narrow) %v590_v34, 8 }
 0x271   :  { %v579_v36 = vpop.permute.xlu1 %578 }
 0x272   :  { %v592_v39 = vsel %vm544_vm10, %v579_v36, 0.0 }
 0x274   :  { %600 = vxpose.xlu0.b32.cont [6/8] (short) (narrow) %v591_v37, 8 }
 0x275   :  { %v584_v40 = vpop.permute.xlu1 %583 }
 0x276   :  { %v593_v41 = vsel %vm545_vm11, %v584_v40, 0.0 }
 0x278   :  { %601 = vxpose.xlu0.b32.cont [7/8] (short) (narrow) %v592_v39, 8 }
 0x27c   :  { %602 = vxpose.xlu0.b32.end [8/8] (short) (narrow) %v593_v41, 8 }
 0x2e0   :  { %v611_v42 = vpop.trf.xlu0 }
 0x2e1   :  { %907 = vmatmul.mubr.msk.f32.vlgmr.msra.gmra.mrb[8].mxu1 %vm59_vm0, %v611_v42 }
 0x3b4   :  { %v696_v44 = vpop.f32.mrb[8].mxu1 }
 0x3b5   :  { %v700_v45 = vadd.f32 %v696_v44, %v594_v43  ;;  %v908_v47 = vpop.f32.mrb[9].mxu1 }
 0x3b7   :  { %702 = vst.msk [vmem:[#allocation2] sm:$0x3] %vm41_vm4, %v700_v45 }
 0x3be   :  { %v706_v50 = vld [vmem:[#allocation2] sm:$0x3] }
 0x3bf   :  { %707 = vst.msk [vmem:[#allocation3] sm:$0x3] %vm41_vm4, %v706_v50 }
 0x3c0   :  { %1024 = shalt.err (!%p1021_p4)
}
 0x3c1   :  { %s1025_s8 = scalar_lea.hbm %s1230_s3, 32 }
 0x3c2   :  { %p1026_p5 = scmp.ne.s32.totalorder %s1230_s3, %s1025_s8  ;;  %p1029_p6 = scmp.lt.u32.totalorder %s1025_s8, %s1230_s3 }
 0x3c4   :  { %p1031_p7 = pnand %p1029_p6, %p1026_p5 }
 0x3c6   :  { %1034 = shalt.err (!%p1031_p7)
}
 0x3c7   :  { %717 = dma.vmem_to_hbm [thread:$0]  %s715_s4, 32, %s1230_s3, [#allocation4]  }
 0x3c8   :  { %1035 = dma.done.wait [#allocation4], 32  }
 0x3c9   :  { %1036 = vsyncadd [#allocation4], 4294967264 }
 0x3ca   :  { %721 = vsyncpa [#allocation4], 1 }

</bundles_post_ra>
